<compile_context>
chip_gen: v6e
topology: v6e:2x2x1
jax: 0.10.0
libtpu: 0.0.40
codegen_flags: <defaults>
</compile_context>

<pallas_src>
import jax
import jax.numpy as jnp
from jax.experimental import pallas as pl
from jax.experimental.pallas import tpu as pltpu

_LANE = 128
_SUBLANE = 8


def _round_up(n, m):
    return ((n + m - 1) // m) * m


def _autoencoder_kernel(
    x_ref,
    w1_ref, b1_ref,
    w2_ref, b2_ref,
    w3_ref, b3_ref,
    w4_ref, b4_ref,
    w5_ref, b5_ref,
    w6_ref, b6_ref,
    dec_ref, enc_ref,
):
    x = x_ref[...]

    # ---- encoder ----
    h = jnp.dot(x, w1_ref[...], preferred_element_type=jnp.float32) + b1_ref[...]
    h = jnp.maximum(h, 0.0)
    h = jnp.dot(h, w2_ref[...], preferred_element_type=jnp.float32) + b2_ref[...]
    h = jnp.maximum(h, 0.0)
    enc = jnp.dot(h, w3_ref[...], preferred_element_type=jnp.float32) + b3_ref[...]

    # ---- decoder ----
    h = jnp.dot(enc, w4_ref[...], preferred_element_type=jnp.float32) + b4_ref[...]
    h = jnp.maximum(h, 0.0)
    h = jnp.dot(h, w5_ref[...], preferred_element_type=jnp.float32) + b5_ref[...]
    h = jnp.maximum(h, 0.0)
    dec = jnp.dot(h, w6_ref[...], preferred_element_type=jnp.float32) + b6_ref[...]

    enc_ref[...] = enc.astype(enc_ref.dtype)
    dec_ref[...] = dec.astype(dec_ref.dtype)


def autoencoder_forward(
    x,
    params,
    *,
    batch_tile=512,                 # main tuning knob; 1024-2048 on v6e, ~half on v7x
    vmem_limit_bytes=48 * 1024 * 1024,   # safe on v7x (64 MiB physical); raise on v5e/v6e
    small_path_max_bytes=8 * 1024 * 1024,
):
    """Autoencoder forward pass as a single fused Pallas kernel.

    x: [B, D] float32.  params: transposed weights w1..w6 ([in,out]) and biases
    b1..b6 ([1,out]).  Returns (decoded [B,D], encoded [B,4]).
    """
    B, D = x.shape
    enc_dim = params["w3"].shape[1]
    D_pad = _round_up(D, _LANE)

    # Lane-dense padding of the feature dim.  Padded w1 rows / w6 cols / b6
    # entries are zero, so the math is bit-identical on the first D columns.
    w1 = jnp.pad(params["w1"], ((0, D_pad - D), (0, 0)))
    w6 = jnp.pad(params["w6"], ((0, 0), (0, D_pad - D)))
    b6 = jnp.pad(params["b6"], ((0, 0), (0, D_pad - D)))
    weights = (
        w1, params["b1"],
        params["w2"], params["b2"],
        params["w3"], params["b3"],
        params["w4"], params["b4"],
        params["w5"], params["b5"],
        w6, b6,
    )
    weight_bytes = sum(int(w.size) * 4 for w in weights)

    flops = 2 * B * (D * 64 + 64 * 32 + 32 * enc_dim
                     + enc_dim * 32 + 32 * 64 + 64 * D)
    cost = pl.CostEstimate(
        flops=flops,
        transcendentals=0,
        bytes_accessed=4 * B * (2 * D + enc_dim) + weight_bytes,
    )

    # ------------------------------------------------------------------
    # Small-problem path: one grid-less invocation, full arrays in VMEM.
    # No per-step pipeline overhead, no grid loop.
    # ------------------------------------------------------------------
    B_small = _round_up(B, _SUBLANE)
    small_bytes = 4 * B_small * (2 * D_pad + enc_dim) + weight_bytes
    if small_bytes <= small_path_max_bytes:
        x_pad = jnp.pad(x, ((0, B_small - B), (0, D_pad - D)))
        dec_pad, enc_pad = pl.pallas_call(
            _autoencoder_kernel,
            out_shape=(
                jax.ShapeDtypeStruct((B_small, D_pad), jnp.float32),
                jax.ShapeDtypeStruct((B_small, enc_dim), jnp.float32),
            ),
            cost_estimate=cost,
            compiler_params=pltpu.CompilerParams(
                vmem_limit_bytes=vmem_limit_bytes),
        )(x_pad, *weights)
        return dec_pad[:B, :D], enc_pad[:B]

    # ------------------------------------------------------------------
    # Tiled path: large batch.  Big batch tiles (>=128 rows, multiple of 8),
    # weights replicated/resident, batch axis parallel (megacore on v7x).
    # ------------------------------------------------------------------
    tb = min(batch_tile, _round_up(B, _SUBLANE))
    tb = _round_up(tb, _SUBLANE)
    B_pad = _round_up(B, tb)
    x_pad = jnp.pad(x, ((0, B_pad - B), (0, D_pad - D)))
    grid = (B_pad // tb,)

    def rep(arr):
        return pl.BlockSpec(arr.shape, lambda i: (0, 0))

    in_specs = [pl.BlockSpec((tb, D_pad), lambda i: (i, 0))] + [rep(w) for w in weights]
    out_specs = (
        pl.BlockSpec((tb, D_pad), lambda i: (i, 0)),
        pl.BlockSpec((tb, enc_dim), lambda i: (i, 0)),
    )
    out_shape = (
        jax.ShapeDtypeStruct((B_pad, D_pad), jnp.float32),
        jax.ShapeDtypeStruct((B_pad, enc_dim), jnp.float32),
    )

    dec_pad, enc_pad = pl.pallas_call(
        _autoencoder_kernel,
        grid=grid,
        in_specs=in_specs,
        out_specs=out_specs,
        out_shape=out_shape,
        cost_estimate=cost,
        compiler_params=pltpu.CompilerParams(
            dimension_semantics=("parallel",),
            vmem_limit_bytes=vmem_limit_bytes),
    )(x_pad, *weights)
    return dec_pad[:B, :D], enc_pad[:B]


def init_params(key, input_dim):
    """Deterministic init mimicking nn.Linear default (uniform +/- 1/sqrt(fan_in)).

    Weights stored already transposed to [in, out]; biases as [1, out].
    """
    layer_dims = [
        (input_dim, 64), (64, 32), (32, 4),       # encoder
        (4, 32), (32, 64), (64, input_dim),       # decoder
    ]
    params = {}
    for idx, (fan_in, fan_out) in enumerate(layer_dims, start=1):
        key, kw, kb = jax.random.split(key, 3)
        bound = 1.0 / jnp.sqrt(jnp.float32(fan_in))
        params[f"w{idx}"] = jax.random.uniform(
            kw, (fan_in, fan_out), jnp.float32, -bound, bound)
        params[f"b{idx}"] = jax.random.uniform(
            kb, (1, fan_out), jnp.float32, -bound, bound)
    return params


def reference_forward(x, params):
    """Pure-JAX reference for correctness checking."""
    h = jnp.maximum(x @ params["w1"] + params["b1"], 0.0)
    h = jnp.maximum(h @ params["w2"] + params["b2"], 0.0)
    enc = h @ params["w3"] + params["b3"]
    h = jnp.maximum(enc @ params["w4"] + params["b4"], 0.0)
    h = jnp.maximum(h @ params["w5"] + params["b5"], 0.0)
    dec = h @ params["w6"] + params["b6"]
    return dec, enc


if __name__ == "__main__":
    key = jax.random.PRNGKey(0)

    # --- small problem: exercises the grid-less single-invocation path ---
    B, D = 8, 16
    key, kx, kp = jax.random.split(key, 3)
    x = jax.random.normal(kx, (B, D), jnp.float32)
    params = init_params(kp, D)

    dec, enc = autoencoder_forward(x, params)
    dec = jax.block_until_ready(dec)
    enc = jax.block_until_ready(enc)

    dec_ref, enc_ref = reference_forward(x, params)
    assert dec.shape == (B, D) and enc.shape == (B, 4)
    assert jnp.allclose(dec, dec_ref, atol=1e-5, rtol=1e-5)
    assert jnp.allclose(enc, enc_ref, atol=1e-5, rtol=1e-5)

    # --- batch-tiled path (forced) with a non-multiple batch size ---
    B2 = 300
    key, kx2 = jax.random.split(key)
    x2 = jax.random.normal(kx2, (B2, D), jnp.float32)
    dec2, enc2 = autoencoder_forward(
        x2, params, batch_tile=128, small_path_max_bytes=0)
    dec2 = jax.block_until_ready(dec2)
    enc2 = jax.block_until_ready(enc2)

    dec2_ref, enc2_ref = reference_forward(x2, params)
    assert dec2.shape == (B2, D) and enc2.shape == (B2, 4)
    assert jnp.allclose(dec2, dec2_ref, atol=1e-5, rtol=1e-5)
    assert jnp.allclose(enc2, enc2_ref, atol=1e-5, rtol=1e-5)

    print("KERNEL_OK")
</pallas_src>

<mosaic_0001>
module attributes {stable_mosaic.version = 11 : i64} {
  func.func @_autoencoder_kernel(%arg0: memref<8x128xf32, #tpu.memory_space<vmem>>, %arg1: memref<128x64xf32, #tpu.memory_space<vmem>>, %arg2: memref<1x64xf32, #tpu.memory_space<vmem>>, %arg3: memref<64x32xf32, #tpu.memory_space<vmem>>, %arg4: memref<1x32xf32, #tpu.memory_space<vmem>>, %arg5: memref<32x4xf32, #tpu.memory_space<vmem>>, %arg6: memref<1x4xf32, #tpu.memory_space<vmem>>, %arg7: memref<4x32xf32, #tpu.memory_space<vmem>>, %arg8: memref<1x32xf32, #tpu.memory_space<vmem>>, %arg9: memref<32x64xf32, #tpu.memory_space<vmem>>, %arg10: memref<1x64xf32, #tpu.memory_space<vmem>>, %arg11: memref<64x128xf32, #tpu.memory_space<vmem>>, %arg12: memref<1x128xf32, #tpu.memory_space<vmem>>, %arg13: memref<8x128xf32, #tpu.memory_space<vmem>>, %arg14: memref<8x4xf32, #tpu.memory_space<vmem>>) attributes {dimension_semantics = [], scalar_prefetch = 0 : i64, scratch_operands = 0 : i64, tpu.core_type = #tpu.core_type<tc>} {
    %c0 = arith.constant 0 : index
    %c0_0 = arith.constant 0 : index
    %0 = vector.load %arg0[%c0, %c0_0] : memref<8x128xf32, #tpu.memory_space<vmem>>, vector<8x128xf32>
    %c0_1 = arith.constant 0 : index
    %c0_2 = arith.constant 0 : index
    %1 = vector.load %arg1[%c0_1, %c0_2] : memref<128x64xf32, #tpu.memory_space<vmem>>, vector<128x64xf32>
    %cst = arith.constant dense<0.000000e+00> : vector<8x64xf32>
    %2 = tpu.matmul %0, %1, %cst {dimension_numbers = #tpu.dot_dimension_numbers<[1], [0], [0], [1], [0, 0, 1, 1], [], []>} : vector<8x128xf32>, vector<128x64xf32>, vector<8x64xf32> -> vector<8x64xf32>
    %c0_3 = arith.constant 0 : index
    %c0_4 = arith.constant 0 : index
    %3 = vector.load %arg2[%c0_3, %c0_4] : memref<1x64xf32, #tpu.memory_space<vmem>>, vector<1x64xf32>
    %4 = vector.broadcast %3 : vector<1x64xf32> to vector<8x64xf32>
    %5 = arith.addf %2, %4 : vector<8x64xf32>
    %cst_5 = arith.constant 0.000000e+00 : f32
    %6 = vector.broadcast %cst_5 : f32 to vector<8x64xf32>
    %7 = arith.maximumf %5, %6 : vector<8x64xf32>
    %c0_6 = arith.constant 0 : index
    %c0_7 = arith.constant 0 : index
    %8 = vector.load %arg3[%c0_6, %c0_7] : memref<64x32xf32, #tpu.memory_space<vmem>>, vector<64x32xf32>
    %cst_8 = arith.constant dense<0.000000e+00> : vector<8x32xf32>
    %9 = tpu.matmul %7, %8, %cst_8 {dimension_numbers = #tpu.dot_dimension_numbers<[1], [0], [0], [1], [0, 0, 1, 1], [], []>} : vector<8x64xf32>, vector<64x32xf32>, vector<8x32xf32> -> vector<8x32xf32>
    %c0_9 = arith.constant 0 : index
    %c0_10 = arith.constant 0 : index
    %10 = vector.load %arg4[%c0_9, %c0_10] : memref<1x32xf32, #tpu.memory_space<vmem>>, vector<1x32xf32>
    %11 = vector.broadcast %10 : vector<1x32xf32> to vector<8x32xf32>
    %12 = arith.addf %9, %11 : vector<8x32xf32>
    %cst_11 = arith.constant 0.000000e+00 : f32
    %13 = vector.broadcast %cst_11 : f32 to vector<8x32xf32>
    %14 = arith.maximumf %12, %13 : vector<8x32xf32>
    %c0_12 = arith.constant 0 : index
    %c0_13 = arith.constant 0 : index
    %15 = vector.load %arg5[%c0_12, %c0_13] : memref<32x4xf32, #tpu.memory_space<vmem>>, vector<32x4xf32>
    %cst_14 = arith.constant dense<0.000000e+00> : vector<8x4xf32>
    %16 = tpu.matmul %14, %15, %cst_14 {dimension_numbers = #tpu.dot_dimension_numbers<[1], [0], [0], [1], [0, 0, 1, 1], [], []>} : vector<8x32xf32>, vector<32x4xf32>, vector<8x4xf32> -> vector<8x4xf32>
    %c0_15 = arith.constant 0 : index
    %c0_16 = arith.constant 0 : index
    %17 = vector.load %arg6[%c0_15, %c0_16] : memref<1x4xf32, #tpu.memory_space<vmem>>, vector<1x4xf32>
    %18 = vector.broadcast %17 : vector<1x4xf32> to vector<8x4xf32>
    %19 = arith.addf %16, %18 : vector<8x4xf32>
    %c0_17 = arith.constant 0 : index
    %c0_18 = arith.constant 0 : index
    %20 = vector.load %arg7[%c0_17, %c0_18] : memref<4x32xf32, #tpu.memory_space<vmem>>, vector<4x32xf32>
    %cst_19 = arith.constant dense<0.000000e+00> : vector<8x32xf32>
    %21 = tpu.matmul %19, %20, %cst_19 {dimension_numbers = #tpu.dot_dimension_numbers<[1], [0], [0], [1], [0, 0, 1, 1], [], []>} : vector<8x4xf32>, vector<4x32xf32>, vector<8x32xf32> -> vector<8x32xf32>
    %c0_20 = arith.constant 0 : index
    %c0_21 = arith.constant 0 : index
    %22 = vector.load %arg8[%c0_20, %c0_21] : memref<1x32xf32, #tpu.memory_space<vmem>>, vector<1x32xf32>
    %23 = vector.broadcast %22 : vector<1x32xf32> to vector<8x32xf32>
    %24 = arith.addf %21, %23 : vector<8x32xf32>
    %cst_22 = arith.constant 0.000000e+00 : f32
    %25 = vector.broadcast %cst_22 : f32 to vector<8x32xf32>
    %26 = arith.maximumf %24, %25 : vector<8x32xf32>
    %c0_23 = arith.constant 0 : index
    %c0_24 = arith.constant 0 : index
    %27 = vector.load %arg9[%c0_23, %c0_24] : memref<32x64xf32, #tpu.memory_space<vmem>>, vector<32x64xf32>
    %cst_25 = arith.constant dense<0.000000e+00> : vector<8x64xf32>
    %28 = tpu.matmul %26, %27, %cst_25 {dimension_numbers = #tpu.dot_dimension_numbers<[1], [0], [0], [1], [0, 0, 1, 1], [], []>} : vector<8x32xf32>, vector<32x64xf32>, vector<8x64xf32> -> vector<8x64xf32>
    %c0_26 = arith.constant 0 : index
    %c0_27 = arith.constant 0 : index
    %29 = vector.load %arg10[%c0_26, %c0_27] : memref<1x64xf32, #tpu.memory_space<vmem>>, vector<1x64xf32>
    %30 = vector.broadcast %29 : vector<1x64xf32> to vector<8x64xf32>
    %31 = arith.addf %28, %30 : vector<8x64xf32>
    %cst_28 = arith.constant 0.000000e+00 : f32
    %32 = vector.broadcast %cst_28 : f32 to vector<8x64xf32>
    %33 = arith.maximumf %31, %32 : vector<8x64xf32>
    %c0_29 = arith.constant 0 : index
    %c0_30 = arith.constant 0 : index
    %34 = vector.load %arg11[%c0_29, %c0_30] : memref<64x128xf32, #tpu.memory_space<vmem>>, vector<64x128xf32>
    %cst_31 = arith.constant dense<0.000000e+00> : vector<8x128xf32>
    %35 = tpu.matmul %33, %34, %cst_31 {dimension_numbers = #tpu.dot_dimension_numbers<[1], [0], [0], [1], [0, 0, 1, 1], [], []>} : vector<8x64xf32>, vector<64x128xf32>, vector<8x128xf32> -> vector<8x128xf32>
    %c0_32 = arith.constant 0 : index
    %c0_33 = arith.constant 0 : index
    %36 = vector.load %arg12[%c0_32, %c0_33] : memref<1x128xf32, #tpu.memory_space<vmem>>, vector<1x128xf32>
    %37 = vector.broadcast %36 : vector<1x128xf32> to vector<8x128xf32>
    %38 = arith.addf %35, %37 : vector<8x128xf32>
    %c0_34 = arith.constant 0 : index
    %c0_35 = arith.constant 0 : index
    %39 = vector.load %arg14[%c0_34, %c0_35] : memref<8x4xf32, #tpu.memory_space<vmem>>, vector<8x4xf32>
    tpu.vector_store %arg14[%c0_34, %c0_35], %19 {strides = array<i32>} : memref<8x4xf32, #tpu.memory_space<vmem>>, vector<8x4xf32>,
    %c0_36 = arith.constant 0 : index
    %c0_37 = arith.constant 0 : index
    %40 = vector.load %arg13[%c0_36, %c0_37] : memref<8x128xf32, #tpu.memory_space<vmem>>, vector<8x128xf32>
    tpu.vector_store %arg13[%c0_36, %c0_37], %38 {strides = array<i32>} : memref<8x128xf32, #tpu.memory_space<vmem>>, vector<8x128xf32>,
    return
  }
}

</mosaic_0001>

<bundles_post_ra>
// kernel: tpu_custom_call.1
= control target key start
LH: loop header
LB: loop body
LE: loop exit
PB: predicated region body
PF: predicated region fallthrough
CT: control target
= control target key end

     0   :  { %v781_v1 = vmov 0.0   ;;  %vm782_vm0 = vmmov 0   ;;  %s1066_s0 = inlined_call_operand.vmem [shape: f32[8,128], index: 0, kind: input, shape index: {}]   ;;  %s1067_s1 = inlined_call_operand.vmem [shape: f32[128,64], index: 1, kind: input, shape index: {}]   ;;  %s1068_s2 = inlined_call_operand.vmem [shape: f32[1,64], index: 2, kind: input, shape index: {}]   ;;  %s1069_s3 = inlined_call_operand.vmem [shape: f32[64,32], index: 3, kind: input, shape index: {}]   ;;  %s1070_s4 = inlined_call_operand.vmem [shape: f32[1,32], index: 4, kind: input, shape index: {}]   ;;  %s1071_s5 = inlined_call_operand.vmem [shape: f32[32,4], index: 5, kind: input, shape index: {}]   ;;  %s1072_s6 = inlined_call_operand.vmem [shape: f32[1,4], index: 6, kind: input, shape index: {}]   ;;  %s1073_s7 = inlined_call_operand.vmem [shape: f32[4,32], index: 7, kind: input, shape index: {}]   ;;  %s1074_s8 = inlined_call_operand.vmem [shape: f32[1,32], index: 8, kind: input, shape index: {}]   ;;  %s1075_s9 = inlined_call_operand.vmem [shape: f32[32,64], index: 9, kind: input, shape index: {}]   ;;  %s1076_s10 = inlined_call_operand.vmem [shape: f32[1,64], index: 10, kind: input, shape index: {}]   ;;  %s1077_s11 = inlined_call_operand.vmem [shape: f32[64,128], index: 11, kind: input, shape index: {}]   ;;  %s1078_s12 = inlined_call_operand.vmem [shape: f32[1,128], index: 12, kind: input, shape index: {}]   ;;  %s1079_s13 = inlined_call_operand.hbm [shape: f32[8,128], index: 13, kind: output, shape index: {0}]   ;;  %s1080_s14 = inlined_call_operand.vmem [shape: f32[8,4], index: 14, kind: output, shape index: {1}]  }
   0x1   :  { %v63_v0 = vld [vmem:[%s1067_s1 + $0x78] sm:$0xff]  ;;  %656 = vmatprep.subr.mxu0 %v781_v1  ;;  %v62_v2 = vld [vmem:[%s1067_s1 + $0x70] sm:$0xff]  ;;  %688 = vmatprep.mubr.msk.f32.mxu0 %vm782_vm0, %v781_v1  ;;  %v61_v3 = vld [vmem:[%s1067_s1 + $0x68] sm:$0xff] }
   0x2   :  { %657 = vmatpush3.msra.mxu0 %v63_v0  ;;  %691 = vmatprep.subr.mxu1 %v781_v1  ;;  %v60_v4 = vld [vmem:[%s1067_s1 + $0x60] sm:$0xff]  ;;  %v149_v5 = vld [vmem:[%s1069_s3 + $0x38] sm:$0xff]  ;;  %v148_v6 = vld [vmem:[%s1069_s3 + $0x30] sm:$0xff] }
   0x3   :  { %658 = vmatprep.subr.mxu0 %v781_v1  ;;  %707 = vmatprep.mubr.msk.f32.mxu1 %vm782_vm0, %v781_v1  ;;  %v59_v7 = vld [vmem:[%s1067_s1 + $0x58] sm:$0xff]  ;;  %v147_v8 = vld [vmem:[%s1069_s3 + $0x28] sm:$0xff] }
   0x4   :  { %659 = vmatpush3.msra.mxu0 %v62_v2  ;;  %692 = vmatpush3.msra.mxu1 %v149_v5 }
   0x5   :  { %660 = vmatprep.subr.mxu0 %v781_v1  ;;  %693 = vmatprep.subr.mxu1 %v781_v1 }
   0x6   :  { %661 = vmatpush3.msra.mxu0 %v61_v3 }
   0x7   :  { %662 = vmatprep.subr.mxu0 %v781_v1 }
   0x8   :  { %20 = vsyncpa [#allocation3], 0  ;;  %663 = vmatpush3.msra.mxu0 %v60_v4  ;;  %694 = vmatpush3.msra.mxu1 %v148_v6  ;;  %v58_v9 = vld [vmem:[%s1067_s1 + $0x50] sm:$0xff]  ;;  %v146_v10 = vld [vmem:[%s1069_s3 + $0x20] sm:$0xff]  ;;  %vm157_vm1 = vcmask 523264   ;;  %vm243_vm2 = vcmask 261120  }
   0x9   :  { %664 = vmatprep.subr.mxu0 %v781_v1  ;;  %695 = vmatprep.subr.mxu1 %v781_v1  ;;  %v57_v11 = vld [vmem:[%s1067_s1 + $0x48] sm:$0xff]  ;;  %v145_v12 = vld [vmem:[%s1069_s3 + $0x18] sm:$0xff]  ;;  %v56_v13 = vld [vmem:[%s1067_s1 + $0x40] sm:$0xff]  ;;  %vm329_vm3 = vcmask 1043456   ;;  %vm325_vm4 = vcmask 31744   ;;  %s783_s27 = smov [#allocation2]  }
   0xa   :  { %665 = vmatpush3.msra.mxu0 %v59_v7  ;;  %696 = vmatpush3.msra.mxu1 %v147_v8  ;;  %v55_v14 = vld [vmem:[%s1067_s1 + $0x38] sm:$0xff]  ;;  %v54_v15 = vld [vmem:[%s1067_s1 + $0x30] sm:$0xff]  ;;  %v53_v16 = vld [vmem:[%s1067_s1 + $0x28] sm:$0xff] }
   0xb   :  { %666 = vmatprep.subr.mxu0 %v781_v1  ;;  %697 = vmatprep.subr.mxu1 %v781_v1  ;;  %v52_v17 = vld [vmem:[%s1067_s1 + $0x20] sm:$0xff]  ;;  %v51_v18 = vld [vmem:[%s1067_s1 + $0x18] sm:$0xff]  ;;  %v50_v19 = vld [vmem:[%s1067_s1 + $0x10] sm:$0xff] }
   0xc   :  { %667 = vmatpush3.msra.mxu0 %v58_v9  ;;  %698 = vmatpush3.msra.mxu1 %v146_v10  ;;  %v49_v20 = vld [vmem:[%s1067_s1 + $0x8] sm:$0xff]  ;;  %v48_v21 = vld [vmem:[%s1067_s1] sm:$0xff]  ;;  %v144_v23 = vld [vmem:[%s1069_s3 + $0x10] sm:$0xff] }
   0xd   :  { %668 = vmatprep.subr.mxu0 %v781_v1  ;;  %699 = vmatprep.subr.mxu1 %v781_v1  ;;  %v47_v22 = vld [vmem:[%s1066_s0] sm:$0xff]  ;;  %v143_v24 = vld [vmem:[%s1069_s3 + $0x8] sm:$0xff]  ;;  %v235_v31 = vld [vmem:[%s1071_s5 + $0x18] sm:$0xff]  ;;  %s585_s0 = sshll.u32 %s783_s27, 4  ;;  %s586_s0 = int_to_ptr.vmem [resolvable:$true] %s585_s0 }
   0xe   :  { %669 = vmatpush3.msra.mxu0 %v57_v11  ;;  %700 = vmatpush3.msra.mxu1 %v145_v12  ;;  %v142_v25 = vld [vmem:[%s1069_s3] sm:$0xff]  ;;  %v234_v32 = vld [vmem:[%s1071_s5 + $0x10] sm:$0xff]  ;;  %v233_v33 = vld [vmem:[%s1071_s5 + $0x8] sm:$0xff]  ;;  %p764_p1 = scmp.lt.s32.totalorder %s586_s0, %s586_s0 }
   0xf   :  { %670 = vmatprep.subr.mxu0 %v781_v1  ;;  %701 = vmatprep.subr.mxu1 %v781_v1  ;;  %v597_v26 = vld [vmem:[%s1068_s2] ss:$0 sm:$0xff]  ;;  %v407_v44 = vld [vmem:[%s1075_s9 + $0x18] sm:$0xff]  ;;  %v406_v46 = vld [vmem:[%s1075_s9 + $0x10] sm:$0xff] }
  0x10   :  { %671 = vmatpush3.msra.mxu0 %v56_v13  ;;  %702 = vmatpush3.msra.mxu1 %v144_v23  ;;  %v232_v34 = vld [vmem:[%s1071_s5] sm:$0xff]  ;;  %v405_v47 = vld [vmem:[%s1075_s9 + $0x8] sm:$0xff]  ;;  %v496_v49 = vld [vmem:[%s1077_s11 + $0x38] sm:$0xff] }
  0x11   :  { %672 = vmatprep.subr.mxu0 %v781_v1  ;;  %703 = vmatprep.subr.mxu1 %v781_v1  ;;  %v598_v35 = vld [vmem:[%s1070_s4] ss:$0 sm:$0xff]  ;;  %v495_v50 = vld [vmem:[%s1077_s11 + $0x30] sm:$0xff]  ;;  %v494_v51 = vld [vmem:[%s1077_s11 + $0x28] sm:$0xff] }
  0x12   :  { %673 = vmatpush3.msra.mxu0 %v55_v14  ;;  %704 = vmatpush3.msra.mxu1 %v143_v24  ;;  %v317_v40 = vld [vmem:[%s1073_s7] sm:$0xf]  ;;  %v492_v53 = vld [vmem:[%s1077_s11 + $0x18] sm:$0xff]  ;;  %v491_v59 = vld [vmem:[%s1077_s11 + $0x10] sm:$0xff] }
  0x13   :  { %674 = vmatprep.subr.mxu0 %v781_v1  ;;  %705 = vmatprep.subr.mxu1 %v781_v1  ;;  %v600_v41 = vld [vmem:[%s1072_s6] ss:$0 sm:$0xff]  ;;  %v490_v60 = vld [vmem:[%s1077_s11 + $0x8] sm:$0xff] }
  0x14   :  { %675 = vmatpush3.msra.mxu0 %v54_v15  ;;  %706 = vmatpush3.msra.mxu1 %v142_v25  ;;  %v404_v48 = vld [vmem:[%s1075_s9] sm:$0xff] }
  0x15   :  { %676 = vmatprep.subr.mxu0 %v781_v1  ;;  %710 = vmatprep.subr.mxu1 %v781_v1  ;;  %v493_v52 = vld [vmem:[%s1077_s11 + $0x20] sm:$0xff] }
  0x16   :  { %677 = vmatpush3.msra.mxu0 %v53_v16  ;;  %v602_v54 = vld [vmem:[%s1074_s8] ss:$0 sm:$0xff] }
  0x17   :  { %678 = vmatprep.subr.mxu0 %v781_v1  ;;  %v489_v61 = vld [vmem:[%s1077_s11] sm:$0xff]  ;;  %s759_s11 = scalar_lea.vmem %s586_s0, 128 }
  0x18   :  { %679 = vmatpush3.msra.mxu0 %v52_v17  ;;  %v605_v62 = vld [vmem:[%s1076_s10] ss:$0 sm:$0xff]  ;;  %p760_p0 = scmp.ne.s32.totalorder %s586_s0, %s759_s11  ;;  %p765_p2 = scmp.lt.s32.totalorder %s759_s11, %s759_s11 }
  0x19   :  { %680 = vmatprep.subr.mxu0 %v781_v1  ;;  %v607_v4 = vld [vmem:[%s1078_s12] ss:$0 sm:$0xff] }
  0x1a   :  { %681 = vmatpush3.msra.mxu0 %v51_v18  ;;  %p766_p3 = por %p765_p2, %p764_p1 }
  0x1b   :  { %682 = vmatprep.subr.mxu0 %v781_v1 }
  0x1c   :  { %683 = vmatpush3.msra.mxu0 %v50_v19  ;;  %p767_p4 = pnand %p766_p3, %p760_p0 }
  0x1d   :  { %684 = vmatprep.subr.mxu0 %v781_v1 }
  0x1e   :  { %685 = vmatpush3.msra.mxu0 %v49_v20 }
  0x1f   :  { %686 = vmatprep.subr.mxu0 %v781_v1 }
  0x20   :  { %687 = vmatpush3.msra.mxu0 %v48_v21 }
  0x21   :  { %689 = vmatmul.mubr.f32.vlgmr.msra.gmra.mxu0 %v47_v22  ;;  %737 = vmatprep.subr.mxu0 %v781_v1 }
  0x22   :  { %753 = vmatprep.mubr.msk.f32.mxu0 %vm782_vm0, %v781_v1  ;;  %738 = vmatpush3.msra.mxu0 %v496_v49 }
  0x23   :  { %739 = vmatprep.subr.mxu0 %v781_v1 }
  0x24   :  { %740 = vmatpush3.msra.mxu0 %v495_v50 }
  0x25   :  { %741 = vmatprep.subr.mxu0 %v781_v1 }
  0x26   :  { %742 = vmatpush3.msra.mxu0 %v494_v51 }
  0x27   :  { %743 = vmatprep.subr.mxu0 %v781_v1 }
  0x28   :  { %744 = vmatpush3.msra.mxu0 %v493_v52 }
  0x29   :  { %745 = vmatprep.subr.mxu0 %v781_v1 }
  0x2a   :  { %746 = vmatpush3.msra.mxu0 %v492_v53 }
  0x2b   :  { %747 = vmatprep.subr.mxu0 %v781_v1 }
  0x2c   :  { %748 = vmatpush3.msra.mxu0 %v491_v59 }
  0x2d   :  { %749 = vmatprep.subr.mxu0 %v781_v1 }
  0x2e   :  { %750 = vmatpush3.msra.mxu0 %v490_v60 }
  0x2f   :  { %751 = vmatprep.subr.mxu0 %v781_v1 }
  0x30   :  { %752 = vmatpush3.msra.mxu0 %v489_v61 }
  0xe1   :  { %v137_v27 = vpop.f32.mrf.mxu0 }
  0xe2   :  { %v138_v28 = vadd.f32 %v597_v26, %v137_v27 }
  0xe3   :  { %v690_v29 = vpop.f32.mrf.mxu0 }
  0xe4   :  { %v141_v30 = vmax.f32 %v138_v28, 0.0 }
  0xe6   :  { %708 = vmatmul.mubr.msk.f32.vlgmr.msra.gmra.mxu1 %vm157_vm1, %v141_v30 }
  0xe7   :  { %711 = vmatpush3.msra.mxu1 %v235_v31  ;;  %718 = vmatprep.mubr.msk.f32.mxu1 %vm782_vm0, %v781_v1 }
  0xe8   :  { %712 = vmatprep.subr.mxu1 %v781_v1 }
  0xe9   :  { %713 = vmatpush3.msra.mxu1 %v234_v32 }
  0xea   :  { %714 = vmatprep.subr.mxu1 %v781_v1 }
  0xeb   :  { %715 = vmatpush3.msra.mxu1 %v233_v33 }
  0xec   :  { %716 = vmatprep.subr.mxu1 %v781_v1 }
  0xed   :  { %717 = vmatpush3.msra.mxu1 %v232_v34 }
  0xee   :  { %721 = vmatprep.subr.mxu1 %v781_v1 }
 0x1a6   :  { %v227_v36 = vpop.f32.mrf.mxu1 }
 0x1a7   :  { %v228_v37 = vadd.f32 %v598_v35, %v227_v36 }
 0x1a8   :  { %v709_v38 = vpop.f32.mrf.mxu1 }
 0x1a9   :  { %v231_v39 = vmax.f32 %v228_v37, 0.0 }
 0x1ab   :  { %719 = vmatmul.mubr.msk.f32.vlgmr.msra.gmra.mxu1 %vm243_vm2, %v231_v39 }
 0x1ac   :  { %722 = vmatpush3.msk.msra.mxu1 %vm329_vm3, %v317_v40  ;;  %723 = vmatprep.mubr.msk.f32.mxu1 %vm782_vm0, %v781_v1 }
 0x1ad   :  { %726 = vmatprep.subr.mxu1 %v781_v1 }
 0x26b   :  { %v313_v42 = vpop.f32.mrf.mxu1 }
 0x26c   :  { %v314_v43 = vadd.f32 %v600_v41, %v313_v42 }
 0x26d   :  { %v720_v45 = vpop.f32.mrf.mxu1 }
 0x26e   :  { %577 = vst.msk [vmem:[%s1080_s14] sm:$0xff] %vm325_vm4, %v314_v43  ;;  %724 = vmatmul.mubr.msk.f32.vlgmr.msra.gmra.mxu1 %vm325_vm4, %v314_v43 }
 0x26f   :  { %727 = vmatpush3.msra.mxu1 %v407_v44  ;;  %734 = vmatprep.mubr.msk.f32.mxu1 %vm782_vm0, %v781_v1 }
 0x270   :  { %728 = vmatprep.subr.mxu1 %v781_v1 }
 0x271   :  { %729 = vmatpush3.msra.mxu1 %v406_v46 }
 0x272   :  { %730 = vmatprep.subr.mxu1 %v781_v1 }
 0x273   :  { %731 = vmatpush3.msra.mxu1 %v405_v47 }
 0x274   :  { %732 = vmatprep.subr.mxu1 %v781_v1 }
 0x275   :  { %733 = vmatpush3.msra.mxu1 %v404_v48 }
 0x32e   :  { %v399_v55 = vpop.f32.mrf.mxu1 }
 0x32f   :  { %v400_v56 = vadd.f32 %v602_v54, %v399_v55 }
 0x330   :  { %v725_v57 = vpop.f32.mrf.mxu1 }
 0x331   :  { %v403_v58 = vmax.f32 %v400_v56, 0.0 }
 0x333   :  { %735 = vmatmul.mubr.msk.f32.vlgmr.msra.gmra.mxu1 %vm243_vm2, %v403_v58 }
 0x3f3   :  { %v484_v63 = vpop.f32.mrf.mxu1 }
 0x3f4   :  { %v485_v0 = vadd.f32 %v605_v62, %v484_v63 }
 0x3f5   :  { %v736_v2 = vpop.f32.mrf.mxu1 }
 0x3f6   :  { %v488_v3 = vmax.f32 %v485_v0, 0.0 }
 0x3f8   :  { %754 = vmatmul.mubr.msk.f32.vlgmr.msra.gmra.mxu0 %vm157_vm1, %v488_v3 }
 0x4b8   :  { %v573_v1 = vpop.f32.mrf.mxu0 }
 0x4b9   :  { %v574_v5 = vadd.f32 %v607_v4, %v573_v1 }
 0x4ba   :  { %v755_v6 = vpop.f32.mrf.mxu0 }
 0x4bb   :  { %578 = vst [vmem:[#allocation2] sm:$0xff] %v574_v5 }
 0x4bc   :  { %770 = shalt.err (!%p767_p4)
}
 0x4bd   :  { %588 = dma.vmem_to_hbm [thread:$0]  %s586_s0, 128, %s1079_s13, [#allocation3]  }
 0x4be   :  { %779 = dma.done.wait [#allocation3], 128  }
 0x4bf   :  { %780 = vsyncadd [#allocation3], 4294967168 }
 0x4c0   :  { %596 = vsyncpa [#allocation3], 1 }

</bundles_post_ra>
